<compile_context>
chip_gen: v6e
topology: v6e:2x2x1
jax: 0.10.0
libtpu: 0.0.40
codegen_flags: <defaults>
</compile_context>

<pallas_src>
import functools

import jax
import jax.numpy as jnp
from jax.experimental import pallas as pl
from jax.experimental.pallas import tpu as pltpu


def fused_kernel(x_ref, w1_ref, gamma_ref, beta_ref, wdw_ref, mask_ref, o_ref,
                 *, cnt, wp):
    # x_ref:     (rows, Cp) bf16   zero-padded NHWC activations, flattened
    #                              (rows = N*Hp*Wp; pad rows/channels are 0)
    # w1_ref:    (Cp, Cp)  bf16    1x1 conv weight, (Cin, Cout), zero padded
    # gamma_ref: (1, Cp)   f32     BN scale (zero padded)
    # beta_ref:  (1, Cp)   f32     BN shift (zero padded)
    # wdw_ref:   (9, Cp)   f32     depthwise 3x3 weights, row k = dh*3 + dw
    # mask_ref:  (rows, 1) f32     1.0 at valid (h < H, w < W) positions else 0
    # o_ref:     (rows, Cp) f32    output (pad rows/channels are don't-care)
    rows, _ = o_ref.shape

    # ---- 1x1 conv == channel matmul on the MXU (bf16 in, f32 accumulate) ----
    y = jnp.dot(x_ref[...], w1_ref[...], preferred_element_type=jnp.float32)

    # ---- BatchNorm (train-mode batch stats) folded to per-channel scale/shift.
    # Padded rows / channels of y are exactly zero, so one sum / sum-of-squares
    # pass divided by the true element count gives exact statistics. ----
    inv_cnt = 1.0 / float(cnt)
    s1 = jnp.sum(y, axis=0, keepdims=True)               # (1, Cp)
    s2 = jnp.sum(y * y, axis=0, keepdims=True)           # (1, Cp)
    mean = s1 * inv_cnt
    var = jnp.maximum(s2 * inv_cnt - mean * mean, 0.0)    # biased, clamped >= 0
    inv = jax.lax.rsqrt(var + 1e-5)
    scale = gamma_ref[...] * inv                           # (1, Cp)
    shift = beta_ref[...] - mean * scale                   # (1, Cp)

    # ---- scale/shift + ReLU; re-zero pad rows (W pad column AND H pad row)
    # with one multiply so every roll below reads zeros at the spatial edges
    # (this is the 3x3 conv's zero padding). ----
    act = jnp.maximum(y * scale + shift, 0.0) * mask_ref[...]

    # ---- Depthwise 3x3, padding=1, as 4 rolls of the full flat slab.
    # tap(dh, dw)[r] = act[r + (dh-1)*Wp + (dw-1)]; every wraparound lands in a
    # zeroed pad slot (pad column w>=W, pad row h>=H), so no masks are needed.
    act_hm1 = pltpu.roll(act, shift=wp, axis=0)            # act[r - Wp]  (dh=0)
    act_hp1 = pltpu.roll(act, shift=rows - wp, axis=0)     # act[r + Wp]  (dh=2)

    wk = [wdw_ref[k:k + 1, :] for k in range(9)]           # (1, Cp), loaded once

    g0 = act_hm1 * wk[0] + act * wk[3] + act_hp1 * wk[6]   # dw = 0 column
    g1 = act_hm1 * wk[1] + act * wk[4] + act_hp1 * wk[7]   # dw = 1 column
    g2 = act_hm1 * wk[2] + act * wk[5] + act_hp1 * wk[8]   # dw = 2 column

    out = (pltpu.roll(g0, shift=1, axis=0)                 # g0[r - 1]
           + g1
           + pltpu.roll(g2, shift=rows - 1, axis=0))       # g2[r + 1]

    o_ref[...] = out                                       # single lane-dense store


def _padded_dims(C, H, W):
    Cp = ((C + 127) // 128) * 128
    Wp = pl.next_power_of_2(max(W + 1, 8))   # >= W+1 so a zero W column exists
    Hp = H + 1                               # >= H+1 so a zero H row exists
    return Cp, Hp, Wp


def prepare_params(w_conv1, gamma, beta, w_dw, N, H, W):
    """One-time weight / mask repacking (kept OUT of the per-call jit)."""
    C = gamma.shape[0]
    Cp, Hp, Wp = _padded_dims(C, H, W)

    # 1x1 conv weight (Cout, Cin, 1, 1) -> (Cin, Cout), zero padded, bf16.
    w1 = jnp.transpose(w_conv1[:, :, 0, 0], (1, 0)).astype(jnp.float32)
    w1 = jnp.pad(w1, ((0, Cp - C), (0, Cp - C))).astype(jnp.bfloat16)

    gamma_p = jnp.pad(gamma.astype(jnp.float32), (0, Cp - C)).reshape(1, Cp)
    beta_p = jnp.pad(beta.astype(jnp.float32), (0, Cp - C)).reshape(1, Cp)

    # Depthwise weight (C, 1, 3, 3) -> (9, Cp), row k = dh*3 + dw.
    wdw = jnp.transpose(w_dw[:, 0, :, :], (1, 2, 0)).reshape(9, C)
    wdw = jnp.pad(wdw.astype(jnp.float32), ((0, 0), (0, Cp - C)))

    # Valid-position mask over the padded (N, Hp, Wp) spatial grid.
    mask = jnp.zeros((N, Hp, Wp), jnp.float32).at[:, :H, :W].set(1.0)
    mask2d = mask.reshape(N * Hp * Wp, 1)

    return w1, gamma_p, beta_p, wdw, mask2d


@jax.jit
def run_module(x_nchw, w1_p, gamma_p, beta_p, wdw_p, mask2d):
    """x_nchw: (N, C, H, W); weights pre-packed by prepare_params. Returns NCHW."""
    N, C, H, W = x_nchw.shape
    Cp, Hp, Wp = _padded_dims(C, H, W)
    rows = N * Hp * Wp

    # NCHW -> NHWC, zero-pad H/W/C, flatten to a tile-aligned 2-D slab, bf16.
    x = jnp.transpose(x_nchw, (0, 2, 3, 1)).astype(jnp.float32)       # (N,H,W,C)
    x = jnp.pad(x, ((0, 0), (0, Hp - H), (0, Wp - W), (0, Cp - C)))
    x2d = x.reshape(rows, Cp).astype(jnp.bfloat16)

    kernel = functools.partial(fused_kernel, cnt=N * H * W, wp=Wp)
    out2d = pl.pallas_call(
        kernel,
        out_shape=jax.ShapeDtypeStruct((rows, Cp), jnp.float32),
        in_specs=[pl.BlockSpec(memory_space=pltpu.MemorySpace.VMEM)] * 6,
        out_specs=pl.BlockSpec(memory_space=pltpu.MemorySpace.VMEM),
    )(x2d, w1_p, gamma_p, beta_p, wdw_p, mask2d)

    out = out2d.reshape(N, Hp, Wp, Cp)[:, :H, :W, :C]
    return jnp.transpose(out, (0, 3, 1, 2))


def reference_forward(x_nchw, w_conv1, gamma, beta, w_dw):
    """Plain-JAX reference mirroring the PyTorch module (train-mode BN)."""
    C = x_nchw.shape[1]
    y = jax.lax.conv_general_dilated(
        x_nchw, w_conv1, window_strides=(1, 1), padding=((0, 0), (0, 0)),
        dimension_numbers=("NCHW", "OIHW", "NCHW"))
    mean = jnp.mean(y, axis=(0, 2, 3), keepdims=True)
    var = jnp.mean((y - mean) ** 2, axis=(0, 2, 3), keepdims=True)
    yn = (y - mean) * jax.lax.rsqrt(var + 1e-5)
    yn = yn * gamma.reshape(1, C, 1, 1) + beta.reshape(1, C, 1, 1)
    a = jnp.maximum(yn, 0.0)
    out = jax.lax.conv_general_dilated(
        a, w_dw, window_strides=(1, 1), padding=((1, 1), (1, 1)),
        dimension_numbers=("NCHW", "OIHW", "NCHW"), feature_group_count=C)
    return out


if __name__ == "__main__":
    key = jax.random.PRNGKey(0)
    k_x, k_w1, k_g, k_b, k_dw = jax.random.split(key, 5)

    N, C, H, W = 1, 232, 7, 7  # matches the module's x343 = randn([1, 232, 7, 7])
    x = jax.random.normal(k_x, (N, C, H, W), jnp.float32)

    # Deterministic parameter init (shapes from the module __init__)
    w_conv1 = jax.random.normal(k_w1, (C, C, 1, 1), jnp.float32) * (1.0 / (C ** 0.5))
    gamma = 1.0 + 0.1 * jax.random.normal(k_g, (C,), jnp.float32)
    beta = 0.1 * jax.random.normal(k_b, (C,), jnp.float32)
    w_dw = jax.random.normal(k_dw, (C, 1, 3, 3), jnp.float32) * (1.0 / 3.0)

    # One-time weight repacking (hoisted out of the per-call jit).
    w1_p, gamma_p, beta_p, wdw_p, mask2d = prepare_params(
        w_conv1, gamma, beta, w_dw, N, H, W)
    (w1_p, gamma_p, beta_p, wdw_p, mask2d) = jax.block_until_ready(
        (w1_p, gamma_p, beta_p, wdw_p, mask2d))

    out = run_module(x, w1_p, gamma_p, beta_p, wdw_p, mask2d)
    jax.block_until_ready(out)

    ref = reference_forward(x, w_conv1, gamma, beta, w_dw)
    assert out.shape == (N, C, H, W), out.shape
    # bf16 MXU pass for the 1x1 conv -> slightly looser tolerance than pure f32.
    assert jnp.allclose(out, ref, atol=3e-2, rtol=3e-2), float(
        jnp.max(jnp.abs(out - ref)))

    print("KERNEL_OK")
</pallas_src>

<mosaic_0001>
module attributes {stable_mosaic.version = 11 : i64} {
  func.func @fused_kernel(%arg0: memref<64x256xbf16, #tpu.memory_space<vmem>>, %arg1: memref<256x256xbf16, #tpu.memory_space<vmem>>, %arg2: memref<1x256xf32, #tpu.memory_space<vmem>>, %arg3: memref<1x256xf32, #tpu.memory_space<vmem>>, %arg4: memref<9x256xf32, #tpu.memory_space<vmem>>, %arg5: memref<64x1xf32, #tpu.memory_space<vmem>>, %arg6: memref<64x256xf32, #tpu.memory_space<vmem>>) attributes {dimension_semantics = [], scalar_prefetch = 0 : i64, scratch_operands = 0 : i64, tpu.core_type = #tpu.core_type<tc>} {
    %c0 = arith.constant 0 : index
    %c0_0 = arith.constant 0 : index
    %0 = vector.load %arg0[%c0, %c0_0] : memref<64x256xbf16, #tpu.memory_space<vmem>>, vector<64x256xbf16>
    %c0_1 = arith.constant 0 : index
    %c0_2 = arith.constant 0 : index
    %1 = vector.load %arg1[%c0_1, %c0_2] : memref<256x256xbf16, #tpu.memory_space<vmem>>, vector<256x256xbf16>
    %cst = arith.constant dense<0.000000e+00> : vector<64x256xf32>
    %2 = tpu.matmul %0, %1, %cst {dimension_numbers = #tpu.dot_dimension_numbers<[1], [0], [0], [1], [0, 0, 1, 1], [], []>} : vector<64x256xbf16>, vector<256x256xbf16>, vector<64x256xf32> -> vector<64x256xf32>
    %cst_3 = arith.constant dense<0.000000e+00> : vector<256xf32>
    %3 = vector.multi_reduction <add>, %2, %cst_3 [0] : vector<64x256xf32> to vector<256xf32>
    %4 = vector.shape_cast %3 : vector<256xf32> to vector<1x256xf32>
    %5 = arith.mulf %2, %2 : vector<64x256xf32>
    %cst_4 = arith.constant dense<0.000000e+00> : vector<256xf32>
    %6 = vector.multi_reduction <add>, %5, %cst_4 [0] : vector<64x256xf32> to vector<256xf32>
    %7 = vector.shape_cast %6 : vector<256xf32> to vector<1x256xf32>
    %cst_5 = arith.constant 0.0204081628 : f32
    %8 = vector.broadcast %cst_5 : f32 to vector<1x256xf32>
    %9 = arith.mulf %4, %8 : vector<1x256xf32>
    %cst_6 = arith.constant 0.0204081628 : f32
    %10 = vector.broadcast %cst_6 : f32 to vector<1x256xf32>
    %11 = arith.mulf %7, %10 : vector<1x256xf32>
    %12 = arith.mulf %9, %9 : vector<1x256xf32>
    %13 = arith.subf %11, %12 : vector<1x256xf32>
    %cst_7 = arith.constant 0.000000e+00 : f32
    %14 = vector.broadcast %cst_7 : f32 to vector<1x256xf32>
    %15 = arith.maximumf %13, %14 : vector<1x256xf32>
    %cst_8 = arith.constant 9.99999974E-6 : f32
    %16 = vector.broadcast %cst_8 : f32 to vector<1x256xf32>
    %17 = arith.addf %15, %16 : vector<1x256xf32>
    %18 = math.rsqrt %17 : vector<1x256xf32>
    %c0_9 = arith.constant 0 : index
    %c0_10 = arith.constant 0 : index
    %19 = vector.load %arg2[%c0_9, %c0_10] : memref<1x256xf32, #tpu.memory_space<vmem>>, vector<1x256xf32>
    %20 = arith.mulf %19, %18 : vector<1x256xf32>
    %c0_11 = arith.constant 0 : index
    %c0_12 = arith.constant 0 : index
    %21 = vector.load %arg3[%c0_11, %c0_12] : memref<1x256xf32, #tpu.memory_space<vmem>>, vector<1x256xf32>
    %22 = arith.mulf %9, %20 : vector<1x256xf32>
    %23 = arith.subf %21, %22 : vector<1x256xf32>
    %24 = vector.broadcast %20 : vector<1x256xf32> to vector<64x256xf32>
    %25 = arith.mulf %2, %24 : vector<64x256xf32>
    %26 = vector.broadcast %23 : vector<1x256xf32> to vector<64x256xf32>
    %27 = arith.addf %25, %26 : vector<64x256xf32>
    %cst_13 = arith.constant 0.000000e+00 : f32
    %28 = vector.broadcast %cst_13 : f32 to vector<64x256xf32>
    %29 = arith.maximumf %27, %28 : vector<64x256xf32>
    %c0_14 = arith.constant 0 : index
    %c0_15 = arith.constant 0 : index
    %30 = vector.load %arg5[%c0_14, %c0_15] : memref<64x1xf32, #tpu.memory_space<vmem>>, vector<64x1xf32>
    %31 = vector.broadcast %30 : vector<64x1xf32> to vector<64x256xf32>
    %32 = arith.mulf %29, %31 : vector<64x256xf32>
    %c8_i32 = arith.constant 8 : i32
    %33 = tpu.dynamic_rotate %32 by %c8_i32 dim 0 : vector<64x256xf32>, i32 -> vector<64x256xf32>
    %c56_i32 = arith.constant 56 : i32
    %34 = tpu.dynamic_rotate %32 by %c56_i32 dim 0 : vector<64x256xf32>, i32 -> vector<64x256xf32>
    %c0_16 = arith.constant 0 : index
    %c0_17 = arith.constant 0 : index
    %35 = vector.load %arg4[%c0_16, %c0_17] : memref<9x256xf32, #tpu.memory_space<vmem>>, vector<1x256xf32>
    %c1 = arith.constant 1 : index
    %c0_18 = arith.constant 0 : index
    %36 = vector.load %arg4[%c1, %c0_18] : memref<9x256xf32, #tpu.memory_space<vmem>>, vector<1x256xf32>
    %c2 = arith.constant 2 : index
    %c0_19 = arith.constant 0 : index
    %37 = vector.load %arg4[%c2, %c0_19] : memref<9x256xf32, #tpu.memory_space<vmem>>, vector<1x256xf32>
    %c3 = arith.constant 3 : index
    %c0_20 = arith.constant 0 : index
    %38 = vector.load %arg4[%c3, %c0_20] : memref<9x256xf32, #tpu.memory_space<vmem>>, vector<1x256xf32>
    %c4 = arith.constant 4 : index
    %c0_21 = arith.constant 0 : index
    %39 = vector.load %arg4[%c4, %c0_21] : memref<9x256xf32, #tpu.memory_space<vmem>>, vector<1x256xf32>
    %c5 = arith.constant 5 : index
    %c0_22 = arith.constant 0 : index
    %40 = vector.load %arg4[%c5, %c0_22] : memref<9x256xf32, #tpu.memory_space<vmem>>, vector<1x256xf32>
    %c6 = arith.constant 6 : index
    %c0_23 = arith.constant 0 : index
    %41 = vector.load %arg4[%c6, %c0_23] : memref<9x256xf32, #tpu.memory_space<vmem>>, vector<1x256xf32>
    %c7 = arith.constant 7 : index
    %c0_24 = arith.constant 0 : index
    %42 = vector.load %arg4[%c7, %c0_24] : memref<9x256xf32, #tpu.memory_space<vmem>>, vector<1x256xf32>
    %c8 = arith.constant 8 : index
    %c0_25 = arith.constant 0 : index
    %43 = vector.load %arg4[%c8, %c0_25] : memref<9x256xf32, #tpu.memory_space<vmem>>, vector<1x256xf32>
    %44 = vector.broadcast %35 : vector<1x256xf32> to vector<64x256xf32>
    %45 = arith.mulf %33, %44 : vector<64x256xf32>
    %46 = vector.broadcast %38 : vector<1x256xf32> to vector<64x256xf32>
    %47 = arith.mulf %32, %46 : vector<64x256xf32>
    %48 = arith.addf %45, %47 : vector<64x256xf32>
    %49 = vector.broadcast %41 : vector<1x256xf32> to vector<64x256xf32>
    %50 = arith.mulf %34, %49 : vector<64x256xf32>
    %51 = arith.addf %48, %50 : vector<64x256xf32>
    %52 = vector.broadcast %36 : vector<1x256xf32> to vector<64x256xf32>
    %53 = arith.mulf %33, %52 : vector<64x256xf32>
    %54 = vector.broadcast %39 : vector<1x256xf32> to vector<64x256xf32>
    %55 = arith.mulf %32, %54 : vector<64x256xf32>
    %56 = arith.addf %53, %55 : vector<64x256xf32>
    %57 = vector.broadcast %42 : vector<1x256xf32> to vector<64x256xf32>
    %58 = arith.mulf %34, %57 : vector<64x256xf32>
    %59 = arith.addf %56, %58 : vector<64x256xf32>
    %60 = vector.broadcast %37 : vector<1x256xf32> to vector<64x256xf32>
    %61 = arith.mulf %33, %60 : vector<64x256xf32>
    %62 = vector.broadcast %40 : vector<1x256xf32> to vector<64x256xf32>
    %63 = arith.mulf %32, %62 : vector<64x256xf32>
    %64 = arith.addf %61, %63 : vector<64x256xf32>
    %65 = vector.broadcast %43 : vector<1x256xf32> to vector<64x256xf32>
    %66 = arith.mulf %34, %65 : vector<64x256xf32>
    %67 = arith.addf %64, %66 : vector<64x256xf32>
    %c1_i32 = arith.constant 1 : i32
    %68 = tpu.dynamic_rotate %51 by %c1_i32 dim 0 : vector<64x256xf32>, i32 -> vector<64x256xf32>
    %69 = arith.addf %68, %59 : vector<64x256xf32>
    %c63_i32 = arith.constant 63 : i32
    %70 = tpu.dynamic_rotate %67 by %c63_i32 dim 0 : vector<64x256xf32>, i32 -> vector<64x256xf32>
    %71 = arith.addf %69, %70 : vector<64x256xf32>
    %c0_26 = arith.constant 0 : index
    %c0_27 = arith.constant 0 : index
    %72 = vector.load %arg6[%c0_26, %c0_27] : memref<64x256xf32, #tpu.memory_space<vmem>>, vector<64x256xf32>
    tpu.vector_store %arg6[%c0_26, %c0_27], %71 {strides = array<i32>} : memref<64x256xf32, #tpu.memory_space<vmem>>, vector<64x256xf32>,
    return
  }
}

</mosaic_0001>

<bundles_post_ra>
// kernel: run_module.1
= control target key start
LH: loop header
LB: loop body
LE: loop exit
PB: predicated region body
PF: predicated region fallthrough
CT: control target
= control target key end

     0   :  { %v1218_v1 = vmov 0   ;;  %s2303_s1 = inlined_call_operand.vmem [shape: bf16[256,256], index: 1, kind: input, shape index: {}]   ;;  %s2304_s0 = inlined_call_operand.vmem [shape: bf16[64,256], index: 0, kind: input, shape index: {}]   ;;  %s2305_s5 = inlined_call_operand.vmem [shape: f32[64,1], index: 5, kind: input, shape index: {}]   ;;  %s2306_s2 = inlined_call_operand.vmem [shape: f32[1,256], index: 2, kind: input, shape index: {}]   ;;  %s2307_s4 = inlined_call_operand.vmem [shape: f32[9,256], index: 4, kind: input, shape index: {}]   ;;  %s2308_s3 = inlined_call_operand.vmem [shape: f32[1,256], index: 3, kind: input, shape index: {}]   ;;  %s2309_s6 = inlined_call_operand.vmem [shape: f32[64,256], index: 6, kind: output, shape index: {}]  }
   0x1   :  { %v1154_v0 = vld [vmem:[%s2303_s1 + $0x74] ss:$8 sps:$4 sm:$0xff]   ;;  %1153 = vset.pattern.permute.xlu1 %v1218_v1  ;;  %1152 = vset.pattern.permute.xlu0 %v1218_v1  ;;  %v1156_v2 = vld [vmem:[%s2303_s1 + $0x70] ss:$8 sps:$4 sm:$0xff]   ;;  %v1157_v3 = vld [vmem:[%s2303_s1 + $0x64] ss:$8 sps:$4 sm:$0xff]  }
   0x2   :  { %263 = vmatprep.subr.bf16.mxu0 %v1154_v0  ;;  %1118 = vmatprep.subr.bf16.mxu1 %v1154_v0  ;;  %v1159_v4 = vld [vmem:[%s2303_s1 + $0x60] ss:$8 sps:$4 sm:$0xff]   ;;  %v1160_v5 = vld [vmem:[%s2303_s1 + $0x54] ss:$8 sps:$4 sm:$0xff]   ;;  %v1162_v6 = vld [vmem:[%s2303_s1 + $0x50] ss:$8 sps:$4 sm:$0xff]  }
   0x3   :  { %264 = vmatpush1.bf16.msra.mxu0 %v1156_v2  ;;  %1134 = vmatpush1.bf16.msra.mxu1 %v1156_v2  ;;  %v1163_v7 = vld [vmem:[%s2303_s1 + $0x44] ss:$8 sps:$4 sm:$0xff]   ;;  %v1165_v8 = vld [vmem:[%s2303_s1 + $0x40] ss:$8 sps:$4 sm:$0xff]   ;;  %v1166_v9 = vld [vmem:[%s2303_s1 + $0x34] ss:$8 sps:$4 sm:$0xff]  }
   0x4   :  { %265 = vmatprep.subr.bf16.mxu0 %v1157_v3  ;;  %1119 = vmatprep.subr.bf16.mxu1 %v1157_v3  ;;  %v1168_v10 = vld [vmem:[%s2303_s1 + $0x30] ss:$8 sps:$4 sm:$0xff]   ;;  %v1169_v11 = vld [vmem:[%s2303_s1 + $0x24] ss:$8 sps:$4 sm:$0xff]   ;;  %v1171_v12 = vld [vmem:[%s2303_s1 + $0x20] ss:$8 sps:$4 sm:$0xff]  }
   0x5   :  { %v1172_v13 = vld [vmem:[%s2303_s1 + $0x14] ss:$8 sps:$4 sm:$0xff]   ;;  %v1204_v14 = vld [vmem:[%s2304_s0 + $0x4] ss:$8 sps:$4 sm:$0xff]   ;;  %v1174_v15 = vld [vmem:[%s2303_s1 + $0x10] ss:$8 sps:$4 sm:$0xff]  }
   0x6   :  { %v1207_v16 = vld [vmem:[%s2304_s0 + $0x24] ss:$8 sps:$4 sm:$0xff]   ;;  %295 = vmatprep.mubr.bf16.mxu0 %v1204_v14  ;;  %v532_v18 = vld [vmem:[%s2305_s5 + $0x10] sm:$0xff]  ;;  %v1177_v19 = vld [vmem:[%s2303_s1] ss:$8 sps:$4 sm:$0xff]  }
   0x7   :  { %266 = vmatpush1.bf16.msra.mxu0 %v1159_v4  ;;  %1135 = vmatpush1.bf16.msra.mxu1 %v1159_v4  ;;  %v1175_v17 = vld [vmem:[%s2303_s1 + $0x4] ss:$8 sps:$4 sm:$0xff]   ;;  %v1178_v21 = vld [vmem:[%s2303_s1 + $0xf4] ss:$8 sps:$4 sm:$0xff]   ;;  %v1180_v24 = vld [vmem:[%s2303_s1 + $0xf0] ss:$8 sps:$4 sm:$0xff]  }
   0x8   :  { %267 = vmatprep.subr.bf16.mxu0 %v1160_v5  ;;  %1120 = vmatprep.subr.bf16.mxu1 %v1160_v5  ;;  %v530_v20 = vld [vmem:[%s2305_s5] sm:$0xff]  ;;  %v533_v22 = vld [vmem:[%s2305_s5 + $0x18] sm:$0xff]  ;;  %v531_v23 = vld [vmem:[%s2305_s5 + $0x8] sm:$0xff] }
   0x9   :  { %315 = vmatprep.mubr.bf16.mxu1 %v1207_v16  ;;  %550 = vperm.xlu1 %1153, %v532_v18   ;;  %v1181_v25 = vld [vmem:[%s2303_s1 + $0xe4] ss:$8 sps:$4 sm:$0xff]   ;;  %v1183_v28 = vld [vmem:[%s2303_s1 + $0xe0] ss:$8 sps:$4 sm:$0xff]   ;;  %v1184_v29 = vld [vmem:[%s2303_s1 + $0xd4] ss:$8 sps:$4 sm:$0xff]  }
   0xa   :  { %540 = vperm.xlu0 %1152, %v530_v20   ;;  %v535_v26 = vld [vmem:[%s2305_s5 + $0x28] sm:$0xff]  ;;  %v534_v27 = vld [vmem:[%s2305_s5 + $0x20] sm:$0xff]  ;;  %v537_v30 = vld [vmem:[%s2305_s5 + $0x38] sm:$0xff] }
   0xb   :  { %268 = vmatpush1.bf16.msra.mxu0 %v1162_v6  ;;  %1136 = vmatpush1.bf16.msra.mxu1 %v1162_v6  ;;  %v536_v31 = vld [vmem:[%s2305_s5 + $0x30] sm:$0xff]  ;;  %v1187_v33 = vld [vmem:[%s2303_s1 + $0xc4] ss:$8 sps:$4 sm:$0xff]   ;;  %v1189_v34 = vld [vmem:[%s2303_s1 + $0xc0] ss:$8 sps:$4 sm:$0xff]  }
   0xc   :  { %269 = vmatprep.subr.bf16.mxu0 %v1163_v7  ;;  %1121 = vmatprep.subr.bf16.mxu1 %v1163_v7  ;;  %v1186_v32 = vld [vmem:[%s2303_s1 + $0xd0] ss:$8 sps:$4 sm:$0xff]   ;;  %v1190_v35 = vld [vmem:[%s2303_s1 + $0xb4] ss:$8 sps:$4 sm:$0xff]   ;;  %v1193_v37 = vld [vmem:[%s2303_s1 + $0xa4] ss:$8 sps:$4 sm:$0xff]  }
   0xd   :  { %555 = vperm.xlu1 %1153, %v533_v22   ;;  %v1192_v36 = vld [vmem:[%s2303_s1 + $0xb0] ss:$8 sps:$4 sm:$0xff]   ;;  %v1195_v38 = vld [vmem:[%s2303_s1 + $0xa0] ss:$8 sps:$4 sm:$0xff]   ;;  %v1196_v39 = vld [vmem:[%s2303_s1 + $0x94] ss:$8 sps:$4 sm:$0xff]  }
   0xe   :  { %545 = vperm.xlu0 %1152, %v531_v23   ;;  %v1198_v40 = vld [vmem:[%s2303_s1 + $0x90] ss:$8 sps:$4 sm:$0xff]   ;;  %v1199_v41 = vld [vmem:[%s2303_s1 + $0x84] ss:$8 sps:$4 sm:$0xff]   ;;  %v1201_v42 = vld [vmem:[%s2303_s1 + $0x80] ss:$8 sps:$4 sm:$0xff]  }
   0xf   :  { %270 = vmatpush1.bf16.msra.mxu0 %v1165_v8  ;;  %1137 = vmatpush1.bf16.msra.mxu1 %v1165_v8  ;;  %v1202_v43 = vld [vmem:[%s2304_s0] ss:$8 sps:$4 sm:$0xff]   ;;  %v1208_v45 = vld [vmem:[%s2304_s0 + $0x14] ss:$8 sps:$4 sm:$0xff]   ;;  %v1210_v47 = vld [vmem:[%s2304_s0 + $0x10] ss:$8 sps:$4 sm:$0xff]  }
  0x10   :  { %271 = vmatprep.subr.bf16.mxu0 %v1166_v9  ;;  %1122 = vmatprep.subr.bf16.mxu1 %v1166_v9  ;;  %v1205_v44 = vld [vmem:[%s2304_s0 + $0x20] ss:$8 sps:$4 sm:$0xff]   ;;  %v1211_v46 = vld [vmem:[%s2304_s0 + $0x34] ss:$8 sps:$4 sm:$0xff]   ;;  %v1213_v48 = vld [vmem:[%s2304_s0 + $0x30] ss:$8 sps:$4 sm:$0xff]  }
  0x11   :  { %565 = vperm.xlu1 %1153, %v535_v26  }
  0x12   :  { %560 = vperm.xlu0 %1152, %v534_v27  }
  0x13   :  { %272 = vmatpush1.bf16.msra.mxu0 %v1168_v10  ;;  %1138 = vmatpush1.bf16.msra.mxu1 %v1168_v10 }
  0x14   :  { %273 = vmatprep.subr.bf16.mxu0 %v1169_v11  ;;  %1123 = vmatprep.subr.bf16.mxu1 %v1169_v11 }
  0x15   :  { %575 = vperm.xlu1 %1153, %v537_v30  }
  0x16   :  { %570 = vperm.xlu0 %1152, %v536_v31  }
  0x17   :  { %274 = vmatpush1.bf16.msra.mxu0 %v1171_v12  ;;  %1139 = vmatpush1.bf16.msra.mxu1 %v1171_v12 }
  0x18   :  { %275 = vmatprep.subr.bf16.mxu0 %v1172_v13  ;;  %1124 = vmatprep.subr.bf16.mxu1 %v1172_v13 }
  0x1b   :  { %276 = vmatpush1.bf16.msra.mxu0 %v1174_v15  ;;  %1140 = vmatpush1.bf16.msra.mxu1 %v1174_v15 }
  0x1c   :  { %277 = vmatprep.subr.bf16.mxu0 %v1175_v17  ;;  %1125 = vmatprep.subr.bf16.mxu1 %v1175_v17 }
  0x1f   :  { %278 = vmatpush1.bf16.msra.mxu0 %v1177_v19  ;;  %1141 = vmatpush1.bf16.msra.mxu1 %v1177_v19 }
  0x20   :  { %279 = vmatprep.subr.bf16.mxu0 %v1178_v21  ;;  %1126 = vmatprep.subr.bf16.mxu1 %v1178_v21 }
  0x23   :  { %280 = vmatpush2.bf16.msra.mxu0 %v1180_v24  ;;  %1142 = vmatpush2.bf16.msra.mxu1 %v1180_v24 }
  0x24   :  { %281 = vmatprep.subr.bf16.mxu0 %v1181_v25  ;;  %1127 = vmatprep.subr.bf16.mxu1 %v1181_v25 }
  0x27   :  { %282 = vmatpush2.bf16.msra.mxu0 %v1183_v28  ;;  %1143 = vmatpush2.bf16.msra.mxu1 %v1183_v28 }
  0x28   :  { %283 = vmatprep.subr.bf16.mxu0 %v1184_v29  ;;  %1128 = vmatprep.subr.bf16.mxu1 %v1184_v29 }
  0x2b   :  { %284 = vmatpush2.bf16.msra.mxu0 %v1186_v32  ;;  %1144 = vmatpush2.bf16.msra.mxu1 %v1186_v32 }
  0x2c   :  { %285 = vmatprep.subr.bf16.mxu0 %v1187_v33  ;;  %1129 = vmatprep.subr.bf16.mxu1 %v1187_v33 }
  0x2f   :  { %286 = vmatpush2.bf16.msra.mxu0 %v1189_v34  ;;  %1145 = vmatpush2.bf16.msra.mxu1 %v1189_v34 }
  0x30   :  { %287 = vmatprep.subr.bf16.mxu0 %v1190_v35  ;;  %1130 = vmatprep.subr.bf16.mxu1 %v1190_v35 }
  0x33   :  { %288 = vmatpush2.bf16.msra.mxu0 %v1192_v36  ;;  %1146 = vmatpush2.bf16.msra.mxu1 %v1192_v36 }
  0x34   :  { %289 = vmatprep.subr.bf16.mxu0 %v1193_v37  ;;  %1131 = vmatprep.subr.bf16.mxu1 %v1193_v37 }
  0x37   :  { %290 = vmatpush2.bf16.msra.mxu0 %v1195_v38  ;;  %1147 = vmatpush2.bf16.msra.mxu1 %v1195_v38 }
  0x38   :  { %291 = vmatprep.subr.bf16.mxu0 %v1196_v39  ;;  %1132 = vmatprep.subr.bf16.mxu1 %v1196_v39 }
  0x3b   :  { %292 = vmatpush2.bf16.msra.mxu0 %v1198_v40  ;;  %1148 = vmatpush2.bf16.msra.mxu1 %v1198_v40 }
  0x3c   :  { %293 = vmatprep.subr.bf16.mxu0 %v1199_v41  ;;  %1133 = vmatprep.subr.bf16.mxu1 %v1199_v41 }
  0x3f   :  { %294 = vmatpush2.bf16.msra.mxu0 %v1201_v42  ;;  %1149 = vmatpush2.bf16.msra.mxu1 %v1201_v42 }
  0x42   :  { %296 = vmatmul.mubr.bf16.vlgmr.msra.gmra.mxu0 %v1202_v43  ;;  %316 = vmatmul.mubr.bf16.vlgmr.msra.gmra.mxu1 %v1205_v44 }
  0x43   :  { %305 = vmatprep.mubr.bf16.mxu0 %v1208_v45  ;;  %325 = vmatprep.mubr.bf16.mxu1 %v1211_v46 }
  0x4a   :  { %306 = vmatmul.mubr.bf16.gmra.mxu0 %v1210_v47  ;;  %326 = vmatmul.mubr.bf16.gmra.mxu1 %v1213_v48 }
 0x102   :  { %v1399_v49 = vpop.f32.mrf.mxu0  ;;  %v1401_v50 = vpop.f32.mrf.mxu1 }
 0x103   :  { %v362_v61 = vmul.f32 %v1399_v49, %v1399_v49  ;;  %v370_v13 = vmul.f32 %v1401_v50, %v1401_v50 }
 0x104   :  { %v1403_v51 = vpop.f32.mrf.mxu0  ;;  %v1405_v52 = vpop.f32.mrf.mxu1 }
 0x105   :  { %v363_v0 = vmul.f32 %v1403_v51, %v1403_v51  ;;  %v371_v21 = vmul.f32 %v1405_v52, %v1405_v52 }
 0x106   :  { %v1407_v53 = vpop.f32.mrf.mxu0  ;;  %v1409_v54 = vpop.f32.mrf.mxu1 }
 0x107   :  { %v364_v57 = vmul.f32 %v1407_v53, %v1407_v53  ;;  %v336_v62 = vadd.f32 %v1407_v53, %v1399_v49  ;;  %v372_v22 = vmul.f32 %v1409_v54, %v1409_v54 }
 0x108   :  { %v1411_v55 = vpop.f32.mrf.mxu0  ;;  %v1413_v56 = vpop.f32.mrf.mxu1 }
 0x109   :  { %v365_v58 = vmul.f32 %v1411_v55, %v1411_v55  ;;  %v378_v2 = vadd.f32 %v364_v57, %v362_v61  ;;  %v349_v3 = vadd.f32 %v1411_v55, %v1403_v51  ;;  %v373_v27 = vmul.f32 %v1413_v56, %v1413_v56 }
 0x10a   :  { %v1419_v59 = vpop.f32.mrf.mxu0  ;;  %v1421_v60 = vpop.f32.mrf.mxu1 }
 0x10b   :  { %v366_v63 = vmul.f32 %v1419_v59, %v1419_v59  ;;  %v337_v4 = vadd.f32 %v336_v62, %v1419_v59  ;;  %v391_v7 = vadd.f32 %v365_v58, %v363_v0  ;;  %v374_v28 = vmul.f32 %v1421_v60, %v1421_v60 }
 0x10c   :  { %v1431_v1 = vpop.f32.mrf.mxu0  ;;  %v1438_v6 = vpop.f32.mrf.mxu1 }
 0x10d   :  { %v367_v5 = vmul.f32 %v1431_v1, %v1431_v1  ;;  %v379_v9 = vadd.f32 %v378_v2, %v366_v63  ;;  %v350_v10 = vadd.f32 %v349_v3, %v1431_v1  ;;  %v375_v34 = vmul.f32 %v1438_v6, %v1438_v6 }
 0x10e   :  { %v1440_v8 = vpop.f32.mrf.mxu0  ;;  %v1454_v20 = vpop.f32.mrf.mxu1 }
 0x10f   :  { %v338_v11 = vadd.f32 %v337_v4, %v1440_v8  ;;  %v368_v12 = vmul.f32 %v1440_v8, %v1440_v8  ;;  %v392_v14 = vadd.f32 %v391_v7, %v367_v5  ;;  %v376_v35 = vmul.f32 %v1454_v20, %v1454_v20 }
 0x110   :  { %v1448_v15 = vpop.f32.mrf.mxu0  ;;  %v1467_v32 = vpop.f32.mrf.mxu1 }
 0x111   :  { %v339_v16 = vadd.f32 %v338_v11, %v1401_v50  ;;  %v380_v17 = vadd.f32 %v379_v9, %v368_v12  ;;  %v351_v18 = vadd.f32 %v350_v10, %v1448_v15  ;;  %v369_v19 = vmul.f32 %v1448_v15, %v1448_v15 }
 0x112   :  { %v377_v40 = vmul.f32 %v1467_v32, %v1467_v32 }
 0x113   :  { %v381_v23 = vadd.f32 %v380_v17, %v370_v13  ;;  %v352_v24 = vadd.f32 %v351_v18, %v1405_v52  ;;  %v393_v25 = vadd.f32 %v392_v14, %v369_v19  ;;  %v340_v26 = vadd.f32 %v339_v16, %v1409_v54 }
 0x115   :  { %v394_v29 = vadd.f32 %v393_v25, %v371_v21  ;;  %v341_v30 = vadd.f32 %v340_v26, %v1421_v60  ;;  %v382_v31 = vadd.f32 %v381_v23, %v372_v22  ;;  %v353_v33 = vadd.f32 %v352_v24, %v1413_v56 }
 0x117   :  { %v342_v36 = vadd.f32 %v341_v30, %v1454_v20  ;;  %v383_v37 = vadd.f32 %v382_v31, %v374_v28  ;;  %v354_v38 = vadd.f32 %v353_v33, %v1438_v6  ;;  %v395_v39 = vadd.f32 %v394_v29, %v373_v27 }
 0x118   :  { %v1219_v33 = vmov 1966171168  }
 0x119   :  { %v343_v41 = vrot.slane %v342_v36, 4  ;;  %v384_v42 = vadd.f32 %v383_v37, %v376_v35  ;;  %v355_v43 = vadd.f32 %v354_v38, %v1467_v32  ;;  %v396_v44 = vadd.f32 %v395_v39, %v375_v34 }
 0x11a   :  { %v423_v34 = vunpack.c.l.s4 %v1219_v33  ;;  %v425_v35 = vlaneseq }
 0x11b   :  { %v344_v45 = vadd.f32 %v343_v41, %v342_v36  ;;  %v385_v46 = vrot.slane %v384_v42, 4  ;;  %v356_v47 = vrot.slane %v355_v43, 4  ;;  %v397_v48 = vadd.f32 %v396_v44, %v377_v40 }
 0x11c   :  { %v424_v36 = vunpack.c.0.s8 %v423_v34  ;;  %v1479_v37 = vshrl.u32 %v425_v35, 7 }
 0x11d   :  { %v345_v57 = vrot.slane %v344_v45, 2  ;;  %v386_v58 = vadd.f32 %v385_v46, %v384_v42  ;;  %v357_v61 = vadd.f32 %v356_v47, %v355_v43  ;;  %v398_v62 = vrot.slane %v397_v48, 4  ;;  %v418_v43 = vld [vmem:[%s2306_s2] sm:$0x3] }
 0x11e   :  { %v427_v39 = vsub.s32 %v424_v36, %v1479_v37  ;;  %v446_v46 = vsub.s32 1, %v1479_v37  ;;  %vm968_vm0 = vcmp.lt.s32.totalorder %v1479_v37, 1  ;;  %vm1017_vm1 = vcmp.lt.s32.totalorder %v1479_v37, 7 }
 0x11f   :  { %v346_v63 = vadd.f32 %v345_v57, %v344_v45  ;;  %v387_v0 = vrot.slane %v386_v58, 2  ;;  %v358_v2 = vrot.slane %v357_v61, 2  ;;  %v399_v3 = vadd.f32 %v398_v62, %v397_v48 }
 0x120   :  { %v442_v45 = vsub.s32 0, %v1479_v37 }
 0x121   :  { %v347_v4 = vrot.slane %v346_v63, 1  ;;  %v388_v5 = vadd.f32 %v387_v0, %v386_v58  ;;  %v359_v7 = vadd.f32 %v358_v2, %v357_v61  ;;  %v400_v9 = vrot.slane %v399_v3, 2  ;;  %v594_v58 = vld [vmem:[%s2307_s4] ss:$8 sm:$0x3] }
 0x122   :  { %v1112_v0 = vld [vmem:[%s2307_s4 + $0x3] ss:$8 sm:$0x3]  ;;  %v1111_v2 = vld [vmem:[%s2307_s4 + $0x2] ss:$8 sm:$0x3] }
 0x123   :  { %v348_v10 = vadd.f32 %v347_v4, %v346_v63  ;;  %v389_v11 = vrot.slane %v388_v5, 1  ;;  %v360_v12 = vrot.slane %v359_v7, 1  ;;  %v401_v13 = vadd.f32 %v400_v9, %v399_v3  ;;  %v1110_v63 = vld [vmem:[%s2307_s4 + $0x1] ss:$8 sm:$0x3] }
 0x124   :  { %v1113_v4 = vld [vmem:[%s2307_s4 + $0x4] ss:$8 sm:$0x3]  ;;  %v1115_v9 = vld [vmem:[%s2307_s4 + $0x6] ss:$8 sm:$0x3] }
 0x125   :  { %v390_v14 = vadd.f32 %v389_v11, %v388_v5  ;;  %v404_v16 = vmul.f32 0.020408163, %v348_v10  ;;  %v361_v17 = vadd.f32 %v360_v12, %v359_v7  ;;  %v402_v18 = vrot.slane %v401_v13, 1  ;;  %v1114_v5 = vld [vmem:[%s2307_s4 + $0x5] ss:$8 sm:$0x3] }
 0x126   :  { %v1511_v7 = vrot.slane %v594_v58, %v442_v45  ;;  %v1116_v10 = vld [vmem:[%s2307_s4 + $0x7] ss:$8 sm:$0x3]  ;;  %v1519_v11 = vrot.slane %v594_v58, %v446_v46  ;;  %v1521_v12 = vrot.slane %v1112_v0, %v442_v45 }
 0x127   :  { %v406_v19 = vmul.f32 0.020408163, %v390_v14  ;;  %v408_v21 = vmul.f32 %v404_v16, %v404_v16  ;;  %v403_v22 = vadd.f32 %v402_v18, %v401_v13  ;;  %v405_v23 = vmul.f32 0.020408163, %v361_v17 }
 0x128   :  { %2334 = vst [vmem:[#allocation2_spill] sm:$0xff] %v1519_v11  ;;  %v1523_v13 = vrot.slane %v1110_v63, %v442_v45  ;;  %v1525_v14 = vrot.slane %v1110_v63, %v446_v46  ;;  %v1117_v17 = vld [vmem:[%s2307_s4 + $0x10] ss:$8 sm:$0x3]  ;;  %v1530_v18 = vrot.slane %v1112_v0, %v446_v46  ;;  %v1557_v33 = vrot.slane %v1116_v10, %v446_v46 }
 0x129   :  { %v410_v24 = vsub.f32 %v406_v19, %v408_v21  ;;  %v407_v25 = vmul.f32 0.020408163, %v403_v22  ;;  %v409_v26 = vmul.f32 %v405_v23, %v405_v23  ;;  %v1532_v19 = vrot.slane %v1111_v2, %v442_v45  ;;  %v438_v22 = vld [vmem:[%s2308_s3] sm:$0x3] }
 0x12a   :  { %2335 = vst [vmem:[#allocation3_spill] sm:$0xff] %v1530_v18  ;;  %v1534_v21 = vrot.slane %v1111_v2, %v446_v46  ;;  %v1559_v34 = vrot.slane %v1117_v17, %v442_v45  ;;  %v1561_v35 = vrot.slane %v1117_v17, %v446_v46 }
 0x12b   :  { %v412_v27 = vmax.f32 %v410_v24, 0.0  ;;  %v411_v28 = vsub.f32 %v407_v25, %v409_v26  ;;  %v1541_v24 = vrot.slane %v1113_v4, %v446_v46  ;;  %v1543_v25 = vrot.slane %v1114_v5, %v442_v45 }
 0x12c   :  { %v1545_v26 = vrot.slane %v1114_v5, %v446_v46 }
 0x12d   :  { %v414_v29 = vadd.f32 1e-05, %v412_v27  ;;  %v413_v30 = vmax.f32 %v411_v28, 0.0  ;;  %v1547_v28 = vrot.slane %v1115_v9, %v442_v45 }
 0x12f   :  { %v415_v31 = vadd.f32 1e-05, %v413_v30  ;;  %1214 = vrsqrt.f32 %v414_v29  ;;  %v1549_v29 = vrot.slane %v1115_v9, %v446_v46  ;;  %v1551_v30 = vrot.slane %v1116_v10, %v442_v45 }
 0x131   :  { %1216 = vrsqrt.f32 %v415_v31 }
 0x13c   :  { %v1215_v38 = vpop.eup %1214 }
 0x13e   :  { %v1217_v40 = vpop.eup %1216 }
 0x13f   :  { %v421_v41 = vcombine.low %v1215_v38, %v1217_v40 }
 0x141   :  { %v428_v42 = vrot.slane %v421_v41, %v427_v39 }
 0x143   :  { %v435_v44 = vrot.slane %v428_v42, %v427_v39 }
 0x145   :  { %v437_v47 = vmul.f32 %v435_v44, %v418_v43 }
 0x147   :  { %v1487_v48 = vrot.slane %v437_v47, %v442_v45  ;;  %v1489_v57 = vrot.slane %v437_v47, %v446_v46  ;;  %v541_v47 = vpop.permute.xlu0 %540 }
 0x149   :  { %v450_v61 = vmul.f32 %v1487_v48, %v404_v16  ;;  %v451_v62 = vmul.f32 %v1489_v57, %v405_v23  ;;  %v1539_v23 = vrot.slane %v1113_v4, %v442_v45  ;;  %v1555_v31 = vmul.f32 %v1489_v57, %v1467_v32 }
 0x14a   :  { %v475_v38 = vmul.f32 %v1487_v48, %v1419_v59  ;;  %v471_v40 = vmul.f32 %v1487_v48, %v1399_v49  ;;  %v472_v32 = vmul.f32 %v1489_v57, %v1403_v51  ;;  %v477_v41 = vmul.f32 %v1487_v48, %v1440_v8 }
 0x14b   :  { %v454_v3 = vcombine.low %v450_v61, %v451_v62  ;;  %2336 = vst [vmem:[#allocation4_spill] sm:$0xff] %v1555_v31  ;;  %v478_v42 = vmul.f32 %v1489_v57, %v1448_v15  ;;  %v473_v43 = vmul.f32 %v1487_v48, %v1407_v53  ;;  %v474_v49 = vmul.f32 %v1489_v57, %v1411_v55 }
 0x14c   :  { %v1585_v51 = vmul.f32 %v1487_v48, %v1409_v54  ;;  %v1589_v8 = vmul.f32 %v1489_v57, %v1413_v56  ;;  %v1593_v53 = vmul.f32 %v1487_v48, %v1401_v50  ;;  %v1597_v15 = vmul.f32 %v1489_v57, %v1405_v52 }
 0x14d   :  { %v461_v16 = vrot.slane %v454_v3, %v427_v39  ;;  %v1601_v55 = vmul.f32 %v1487_v48, %v1454_v20  ;;  %v1613_v17 = vmul.f32 %v1487_v48, %v1421_v60 }
 0x14f   :  { %v468_v27 = vrot.slane %v461_v16, %v427_v39  ;;  %v476_v39 = vmul.f32 %v1489_v57, %v1431_v1  ;;  %v551_v1 = vpop.permute.xlu1 %550  ;;  %2337 = vst [vmem:[#allocation5_spill] sm:$0xff] %v1613_v17 }
 0x151   :  { %v470_v36 = vsub.f32 %v438_v22, %v468_v27  ;;  %v1617_v22 = vmul.f32 %v1489_v57, %v1438_v6 }
 0x153   :  { %v1577_v44 = vrot.slane %v470_v36, %v442_v45  ;;  %v1579_v59 = vrot.slane %v470_v36, %v446_v46  ;;  %v556_v16 = vpop.permute.xlu1 %555  ;;  %2338 = vst [vmem:[#allocation6_spill] sm:$0xff] %v1617_v22 }
 0x155   :  { %v502_v54 = vadd.f32 %v1577_v44, %v475_v38  ;;  %v503_v45 = vadd.f32 %v1579_v59, %v476_v39  ;;  %v498_v46 = vadd.f32 %v1577_v44, %v471_v40  ;;  %v499_v56 = vadd.f32 %v1579_v59, %v472_v32  ;;  %v546_v40 = vpop.permute.xlu0 %545 }
 0x156   :  { %v504_v58 = vadd.f32 %v1577_v44, %v477_v41  ;;  %v505_v50 = vadd.f32 %v1579_v59, %v478_v42  ;;  %v500_v61 = vadd.f32 %v1577_v44, %v473_v43  ;;  %v501_v52 = vadd.f32 %v1579_v59, %v474_v49 }
 0x157   :  { %v518_v62 = vmax.f32 %v502_v54, 0.0  ;;  %v519_v63 = vmax.f32 %v503_v45, 0.0  ;;  %v514_v20 = vmax.f32 %v498_v46, 0.0  ;;  %v515_v0 = vmax.f32 %v499_v56, 0.0 }
 0x158   :  { %v520_v2 = vmax.f32 %v504_v58, 0.0  ;;  %v521_v3 = vmax.f32 %v505_v50, 0.0  ;;  %v516_v4 = vmax.f32 %v500_v61, 0.0  ;;  %v517_v5 = vmax.f32 %v501_v52, 0.0 }
 0x159   :  { %v582_v9 = vmul.f32 %v551_v1, %v518_v62  ;;  %v583_v10 = vmul.f32 %v551_v1, %v519_v63  ;;  %v578_v27 = vmul.f32 %v541_v47, %v514_v20  ;;  %v579_v36 = vmul.f32 %v541_v47, %v515_v0 }
 0x15a   :  { %v1619_v38 = vmul.f32 %v556_v16, %v520_v2  ;;  %v1621_v39 = vmul.f32 %v556_v16, %v521_v3  ;;  %v1625_v42 = vmul.f32 %v546_v40, %v516_v4  ;;  %v1627_v43 = vmul.f32 %v546_v40, %v517_v5 }
 0x15b   :  { %v628_v32 = vmul.f32 %v1511_v7, %v582_v9  ;;  %v629_v41 = vmul.f32 %v1519_v11, %v583_v10  ;;  %v1630_v60 = vmul.f32 %v1521_v12, %v582_v9  ;;  %v1633_v6 = vmul.f32 %v1530_v18, %v583_v10 }
 0x15c   :  { %v1636_v48 = vmul.f32 %v1547_v28, %v582_v9  ;;  %v1639_v57 = vmul.f32 %v1549_v29, %v583_v10  ;;  %v741_v1 = vmul.f32 %v1523_v13, %v582_v9  ;;  %v742_v49 = vmul.f32 %v1525_v14, %v583_v10 }
 0x15d   :  { %v1644_v47 = vmul.f32 %v1539_v23, %v582_v9  ;;  %v1647_v54 = vmul.f32 %v1541_v24, %v583_v10  ;;  %v1650_v45 = vmul.f32 %v1551_v30, %v582_v9  ;;  %v1653_v46 = vmul.f32 %v1557_v33, %v583_v10 }
 0x15e   :  { %v854_v56 = vmul.f32 %v1532_v19, %v582_v9  ;;  %v855_v58 = vmul.f32 %v1534_v21, %v583_v10  ;;  %v1658_v50 = vmul.f32 %v1543_v25, %v582_v9  ;;  %v1661_v61 = vmul.f32 %v1545_v26, %v583_v10 }
 0x15f   :  { %v1664_v52 = vmul.f32 %v1559_v34, %v582_v9  ;;  %v1667_v62 = vmul.f32 %v1561_v35, %v583_v10  ;;  %v624_v63 = vmul.f32 %v1511_v7, %v578_v27  ;;  %v625_v20 = vmul.f32 %v1519_v11, %v579_v36 }
 0x160   :  { %v1672_v0 = vmul.f32 %v1521_v12, %v578_v27  ;;  %v1675_v2 = vmul.f32 %v1530_v18, %v579_v36  ;;  %v1678_v3 = vmul.f32 %v1547_v28, %v578_v27  ;;  %v1681_v4 = vmul.f32 %v1549_v29, %v579_v36 }
 0x161   :  { %v737_v5 = vmul.f32 %v1523_v13, %v578_v27  ;;  %v738_v9 = vmul.f32 %v1525_v14, %v579_v36  ;;  %v1686_v10 = vmul.f32 %v1539_v23, %v578_v27  ;;  %v1689_v16 = vmul.f32 %v1541_v24, %v579_v36 }
 0x162   :  { %2339 = vst [vmem:[#allocation7_spill] sm:$0xff] %v1672_v0  ;;  %2340 = vst [vmem:[#allocation8_spill] sm:$0xff] %v1675_v2  ;;  %v1692_v40 = vmul.f32 %v1551_v30, %v578_v27  ;;  %v1695_v2 = vmul.f32 %v1557_v33, %v579_v36  ;;  %v1704_v0 = vmul.f32 %v1543_v25, %v578_v27 }
 0x163   :  { %2341 = vst [vmem:[#allocation9_spill] sm:$0xff] %v1678_v3  ;;  %2342 = vst [vmem:[#allocation10_spill] sm:$0xff] %v1681_v4  ;;  %v1698_v3 = vmul.f32 %v1532_v19, %v578_v27  ;;  %v1701_v4 = vmul.f32 %v1534_v21, %v579_v36  ;;  %v656_v22 = vmul.f32 %v1530_v18, %v1621_v39 }
 0x164   :  { %2343 = vst [vmem:[#allocation11_spill] sm:$0xff] %v1686_v10  ;;  %2344 = vst [vmem:[#allocation12_spill] sm:$0xff] %v1689_v16  ;;  %v1707_v10 = vmul.f32 %v1545_v26, %v579_v36  ;;  %v1710_v16 = vmul.f32 %v1559_v34, %v578_v27  ;;  %v1721_v17 = vmul.f32 %v1511_v7, %v1619_v38 }
 0x165   :  { %2345 = vst [vmem:[#allocation13_spill] sm:$0xff] %v1692_v40  ;;  %2346 = vst [vmem:[#allocation14_spill] sm:$0xff] %v1695_v2  ;;  %v1713_v40 = vmul.f32 %v1561_v35, %v579_v36  ;;  %v655_v2 = vmul.f32 %v1521_v12, %v1619_v38  ;;  %v696_v27 = vmul.f32 %v1547_v28, %v1619_v38 }
 0x166   :  { %2347 = vst [vmem:[#allocation15_spill] sm:$0xff] %v1704_v0  ;;  %2348 = vst [vmem:[#allocation16_spill] sm:$0xff] %v1707_v10  ;;  %v1725_v0 = vmul.f32 %v1519_v11, %v1621_v39  ;;  %v697_v36 = vmul.f32 %v1549_v29, %v1621_v39  ;;  %v768_v10 = vmul.f32 %v1539_v23, %v1619_v38 }
 0x167   :  { %2349 = vst [vmem:[#allocation17_spill] sm:$0xff] %v1710_v16  ;;  %2350 = vst [vmem:[#allocation18_spill] sm:$0xff] %v1713_v40  ;;  %v1731_v40 = vadd.f32 %v655_v2, %v628_v32  ;;  %v1733_v16 = vadd.f32 %v656_v22, %v629_v41  ;;  %v1741_v31 = vmul.f32 %v1523_v13, %v1619_v38 }
 0x168   :  { %2351 = vst [vmem:[#allocation19_spill] sm:$0xff] %v1721_v17  ;;  %2352 = vst [vmem:[#allocation20_spill] sm:$0xff] %v1725_v0  ;;  %v769_v17 = vmul.f32 %v1541_v24, %v1621_v39  ;;  %v1745_v0 = vmul.f32 %v1525_v14, %v1621_v39  ;;  %v809_v32 = vmul.f32 %v1551_v30, %v1619_v38 }
 0x169   :  { %2353 = vst [vmem:[#allocation21_spill] sm:$0xff] %v1731_v40  ;;  %2354 = vst [vmem:[#allocation22_spill] sm:$0xff] %v1733_v16  ;;  %v810_v22 = vmul.f32 %v1557_v33, %v1621_v39  ;;  %v1751_v41 = vadd.f32 %v768_v10, %v741_v1  ;;  %v881_v16 = vmul.f32 %v1543_v25, %v1619_v38 }
 0x16a   :  { %2355 = vst [vmem:[#allocation23_spill] sm:$0xff] %v1741_v31  ;;  %2356 = vst [vmem:[#allocation24_spill] sm:$0xff] %v1745_v0  ;;  %v1753_v2 = vadd.f32 %v769_v17, %v742_v49  ;;  %v882_v31 = vmul.f32 %v1545_v26, %v1621_v39  ;;  %v1761_v40 = vmul.f32 %v1532_v19, %v1619_v38 }
 0x16b   :  { %2357 = vst [vmem:[#allocation25_spill] sm:$0xff] %v1751_v41  ;;  %v1765_v0 = vmul.f32 %v1534_v21, %v1621_v39  ;;  %v626_v1 = vmul.f32 %v1511_v7, %v1625_v42  ;;  %v627_v17 = vmul.f32 %v1519_v11, %v1627_v43  ;;  %v1771_v49 = vadd.f32 %v881_v16, %v854_v56 }
 0x16c   :  { %2358 = vst [vmem:[#allocation26_spill] sm:$0xff] %v1753_v2  ;;  %2359 = vst [vmem:[#allocation27_spill] sm:$0xff] %v1761_v40  ;;  %v1773_v10 = vadd.f32 %v882_v31, %v855_v58  ;;  %v651_v2 = vmul.f32 %v1521_v12, %v1625_v42  ;;  %v652_v40 = vmul.f32 %v1530_v18, %v1627_v43 }
 0x16d   :  { %2360 = vst [vmem:[#allocation28_spill] sm:$0xff] %v1765_v0  ;;  %2361 = vst [vmem:[#allocation29_spill] sm:$0xff] %v1771_v49  ;;  %v922_v0 = vmul.f32 %v1559_v34, %v1619_v38  ;;  %v923_v41 = vmul.f32 %v1561_v35, %v1621_v39  ;;  %v669_v11 = vadd.f32 %v1630_v60, %v626_v1 }
 0x16e   :  { %2362 = vst [vmem:[#allocation30_spill] sm:$0xff] %v1773_v10  ;;  %v670_v56 = vadd.f32 %v1633_v6, %v627_v17  ;;  %v667_v31 = vadd.f32 %v651_v2, %v624_v63  ;;  %v668_v58 = vadd.f32 %v652_v40, %v625_v20  ;;  %v739_v16 = vmul.f32 %v1523_v13, %v1625_v42 }
 0x16f   :  { %v740_v10 = vmul.f32 %v1525_v14, %v1627_v43  ;;  %v1790_v49 = vadd.f32 %v696_v27, %v669_v11  ;;  %v764_v38 = vmul.f32 %v1539_v23, %v1625_v42  ;;  %v765_v39 = vmul.f32 %v1541_v24, %v1627_v43 }
 0x170   :  { %v1792_v18 = vadd.f32 %v697_v36, %v670_v56  ;;  %v1801_v60 = vmul.f32 %v1547_v28, %v1625_v42  ;;  %v1805_v6 = vmul.f32 %v1549_v29, %v1627_v43  ;;  %v782_v11 = vadd.f32 %v1644_v47, %v739_v16 }
 0x171   :  { %v783_v63 = vadd.f32 %v1647_v54, %v740_v10  ;;  %v1810_v20 = vadd.f32 %v1636_v48, %v667_v31  ;;  %v1813_v40 = vadd.f32 %v1639_v57, %v668_v58  ;;  %v780_v27 = vadd.f32 %v764_v38, %v737_v5 }
 0x172   :  { %2363 = vst [vmem:[#allocation31_spill] sm:$0xff] %v1805_v6  ;;  %v781_v36 = vadd.f32 %v765_v39, %v738_v9  ;;  %v825_v2 = vadd.f32 %v809_v32, %v782_v11  ;;  %v852_v17 = vmul.f32 %v1532_v19, %v1625_v42  ;;  %v853_v56 = vmul.f32 %v1534_v21, %v1627_v43 }
 0x173   :  { %2364 = vst [vmem:[#allocation32_spill] sm:$0xff] %v1810_v20  ;;  %2365 = vst [vmem:[#allocation33_spill] sm:$0xff] %v1813_v40  ;;  %v826_v1 = vadd.f32 %v810_v22, %v783_v63  ;;  %v1821_v47 = vmul.f32 %v1551_v30, %v1625_v42  ;;  %v1825_v48 = vmul.f32 %v1557_v33, %v1627_v43  ;;  %v2317_v58 = vrot.slane %v1810_v20, 7 }
 0x174   :  { %v877_v57 = vmul.f32 %v1543_v25, %v1625_v42  ;;  %v878_v54 = vmul.f32 %v1545_v26, %v1627_v43  ;;  %v1832_v5 = vadd.f32 %v1650_v45, %v780_v27  ;;  %v1835_v9 = vadd.f32 %v1653_v46, %v781_v36 }
 0x175   :  { %2366 = vst [vmem:[#allocation34_spill] sm:$0xff] %v1821_v47  ;;  %2367 = vst [vmem:[#allocation35_spill] sm:$0xff] %v1825_v48  ;;  %v895_v32 = vadd.f32 %v1658_v50, %v852_v17  ;;  %v896_v22 = vadd.f32 %v1661_v61, %v853_v56  ;;  %v2316_v16 = vrot.slane %v1813_v40, 7  ;;  %v2321_v45 = vrot.slane %v1790_v49, 7  ;;  %v2392_v47 = vld [vmem:[#allocation21_spill] sm:$0xff] }
 0x176   :  { %2368 = vst [vmem:[#allocation36_spill] sm:$0xff] %v1832_v5  ;;  %2369 = vst [vmem:[#allocation37_spill] sm:$0xff] %v1835_v9  ;;  %v893_v10 = vadd.f32 %v877_v57, %v1698_v3  ;;  %v894_v31 = vadd.f32 %v878_v54, %v1701_v4  ;;  %v2320_v46 = vrot.slane %v1792_v18, 7  ;;  %v508_v3 = vadd.f32 %v1577_v44, %v1585_v51  ;;  %v2374_v57 = vld [vmem:[#allocation4_spill] sm:$0xff] }
 0x177   :  { %v1843_v38 = vadd.f32 %v922_v0, %v895_v32  ;;  %v1845_v39 = vadd.f32 %v923_v41, %v896_v22  ;;  %v509_v4 = vadd.f32 %v1579_v59, %v1589_v8  ;;  %v979_v0 = vsel %vm968_vm0, %v2317_v58, %v2321_v45 }
 0x178   :  { %v1850_v50 = vadd.f32 %v1664_v52, %v893_v10  ;;  %v1853_v61 = vadd.f32 %v1667_v62, %v894_v31  ;;  %v980_v52 = vsel %vm968_vm0, %v2316_v16, %v2320_v46  ;;  %v1873_v41 = vadd.f32 %v979_v0, %v825_v2  ;;  %v2382_v16 = vld [vmem:[#allocation6_spill] sm:$0xff] }
 0x179   :  { %v2319_v62 = vrot.slane %v1843_v38, 1  ;;  %v2318_v51 = vrot.slane %v1845_v39, 1  ;;  %v1875_v8 = vadd.f32 %v980_v52, %v826_v1  ;;  %v524_v27 = vmax.f32 %v508_v3, 0.0 }
 0x17a   :  { %2370 = vst [vmem:[#allocation38_spill] sm:$0xff] %v1850_v50  ;;  %2371 = vst [vmem:[#allocation39_spill] sm:$0xff] %v1853_v61  ;;  %v2315_v11 = vrot.slane %v1850_v50, 1  ;;  %v2314_v63 = vrot.slane %v1853_v61, 1  ;;  %v525_v36 = vmax.f32 %v509_v4, 0.0  ;;  %v506_v17 = vadd.f32 %v1577_v44, %v1593_v53  ;;  %v566_v53 = vpop.permute.xlu1 %565 }
 0x17b   :  { %v507_v56 = vadd.f32 %v1579_v59, %v1597_v15  ;;  %v512_v15 = vadd.f32 %v1577_v44, %v1601_v55  ;;  %v513_v54 = vadd.f32 %v1579_v59, %v2374_v57  ;;  %v1905_v32 = vmul.f32 %v1559_v34, %v1625_v42  ;;  %v2378_v55 = vld [vmem:[#allocation2_spill] sm:$0xff]  ;;  %v2380_v57 = vld [vmem:[#allocation5_spill] sm:$0xff] }
 0x17c   :  { %v1889_v2 = vsel %vm1017_vm1, %v2315_v11, %v2319_v62  ;;  %v1897_v1 = vsel %vm1017_vm1, %v2314_v63, %v2318_v51  ;;  %v1909_v22 = vmul.f32 %v1561_v35, %v1627_v43  ;;  %v588_v10 = vmul.f32 %v566_v53, %v524_v27  ;;  %v561_v62 = vpop.permute.xlu0 %560 }
 0x17d   :  { %2372 = vst [vmem:[#allocation40_spill] sm:$0xff] %v1889_v2  ;;  %2373 = vst [vmem:[#allocation41_spill] sm:$0xff] %v1897_v1  ;;  %v589_v31 = vmul.f32 %v566_v53, %v525_v36  ;;  %v522_v3 = vmax.f32 %v506_v17, 0.0  ;;  %v523_v4 = vmax.f32 %v507_v56, 0.0  ;;  %v528_v0 = vmax.f32 %v512_v15, 0.0  ;;  %v2384_v36 = vld [vmem:[#allocation3_spill] sm:$0xff] }
 0x17e   :  { %2375 = vst [vmem:[#allocation4_spill] sm:$0xff] %v1905_v32  ;;  %2376 = vst [vmem:[#allocation42_spill] sm:$0xff] %v1909_v22  ;;  %v529_v52 = vmax.f32 %v513_v54, 0.0  ;;  %v1912_v63 = vmul.f32 %v1511_v7, %v588_v10  ;;  %v1919_v42 = vadd.f32 %v1577_v44, %v2380_v57  ;;  %v1923_v43 = vadd.f32 %v1579_v59, %v2382_v16 }
 0x17f   :  { %v1915_v11 = vmul.f32 %v2378_v55, %v589_v31  ;;  %v659_v27 = vmul.f32 %v1521_v12, %v588_v10  ;;  %v660_v17 = vmul.f32 %v2384_v36, %v589_v31  ;;  %v700_v56 = vmul.f32 %v1547_v28, %v588_v10 }
 0x180   :  { %2377 = vst [vmem:[#allocation43_spill] sm:$0xff] %v1912_v63  ;;  %2381 = vst [vmem:[#allocation5_spill] sm:$0xff] %v1919_v42  ;;  %v701_v53 = vmul.f32 %v1549_v29, %v589_v31  ;;  %v1930_v15 = vmul.f32 %v1523_v13, %v588_v10  ;;  %v1933_v54 = vmul.f32 %v1525_v14, %v589_v31  ;;  %v2393_v42 = vld [vmem:[#allocation22_spill] sm:$0xff] }
 0x181   :  { %2379 = vst [vmem:[#allocation2_spill] sm:$0xff] %v1915_v11  ;;  %2383 = vst [vmem:[#allocation6_spill] sm:$0xff] %v1923_v43  ;;  %v772_v44 = vmul.f32 %v1539_v23, %v588_v10  ;;  %v773_v57 = vmul.f32 %v1541_v24, %v589_v31  ;;  %v813_v59 = vmul.f32 %v1551_v30, %v588_v10  ;;  %v576_v11 = vpop.permute.xlu1 %575 }
 0x182   :  { %2385 = vst [vmem:[#allocation3_spill] sm:$0xff] %v1930_v15  ;;  %2386 = vst [vmem:[#allocation44_spill] sm:$0xff] %v1933_v54  ;;  %v814_v16 = vmul.f32 %v1557_v33, %v589_v31  ;;  %v1940_v58 = vmul.f32 %v1532_v19, %v588_v10  ;;  %v1943_v51 = vmul.f32 %v1534_v21, %v589_v31 }
 0x183   :  { %v1946_v46 = vmul.f32 %v1543_v25, %v588_v10  ;;  %v1949_v45 = vmul.f32 %v1545_v26, %v589_v31  ;;  %v586_v54 = vmul.f32 %v561_v62, %v522_v3  ;;  %v587_v15 = vmul.f32 %v561_v62, %v523_v4  ;;  %v2389_v4 = vld [vmem:[#allocation19_spill] sm:$0xff] }
 0x184   :  { %2387 = vst [vmem:[#allocation45_spill] sm:$0xff] %v1940_v58  ;;  %2388 = vst [vmem:[#allocation46_spill] sm:$0xff] %v1943_v51  ;;  %v926_v63 = vmul.f32 %v1559_v34, %v588_v10  ;;  %v927_v61 = vmul.f32 %v1561_v35, %v589_v31  ;;  %v1953_v50 = vmul.f32 %v576_v11, %v528_v0 }
 0x185   :  { %v1955_v58 = vmul.f32 %v576_v11, %v529_v52  ;;  %v632_v51 = vmul.f32 %v1511_v7, %v586_v54  ;;  %v633_v1 = vmul.f32 %v2378_v55, %v587_v15  ;;  %v657_v2 = vmul.f32 %v1521_v12, %v586_v54  ;;  %v2390_v11 = vld [vmem:[#allocation20_spill] sm:$0xff] }
 0x186   :  { %v658_v9 = vmul.f32 %v2384_v36, %v587_v15  ;;  %v698_v3 = vmul.f32 %v1547_v28, %v586_v54  ;;  %v699_v62 = vmul.f32 %v1549_v29, %v587_v15  ;;  %v745_v5 = vmul.f32 %v1523_v13, %v586_v54 }
 0x187   :  { %v673_v0 = vadd.f32 %v657_v2, %v2389_v4  ;;  %v746_v40 = vmul.f32 %v1525_v14, %v587_v15  ;;  %v1969_v20 = vadd.f32 %v659_v27, %v632_v51  ;;  %v1971_v22 = vadd.f32 %v660_v17, %v633_v1 }
 0x188   :  { %v674_v52 = vadd.f32 %v658_v9, %v2390_v11  ;;  %v770_v32 = vmul.f32 %v1539_v23, %v586_v54  ;;  %v771_v48 = vmul.f32 %v1541_v24, %v587_v15  ;;  %v714_v10 = vadd.f32 %v698_v3, %v2392_v47  ;;  %v2394_v9 = vld [vmem:[#allocation23_spill] sm:$0xff]  ;;  %v2395_v11 = vld [vmem:[#allocation24_spill] sm:$0xff] }
 0x189   :  { %2391 = vst [vmem:[#allocation19_spill] sm:$0xff] %v1971_v22  ;;  %v715_v31 = vadd.f32 %v699_v62, %v2393_v42  ;;  %v1977_v43 = vadd.f32 %v700_v56, %v673_v0  ;;  %v811_v51 = vmul.f32 %v1551_v30, %v586_v54  ;;  %v812_v1 = vmul.f32 %v1557_v33, %v587_v15  ;;  %v2398_v56 = vld [vmem:[#allocation25_spill] sm:$0xff] }
 0x18a   :  { %v1979_v2 = vadd.f32 %v701_v53, %v674_v52  ;;  %v786_v4 = vadd.f32 %v770_v32, %v2394_v9  ;;  %v787_v6 = vadd.f32 %v771_v48, %v2395_v11  ;;  %v1985_v27 = vadd.f32 %v772_v44, %v745_v5  ;;  %v2399_v53 = vld [vmem:[#allocation26_spill] sm:$0xff]  ;;  %v2400_v9 = vld [vmem:[#allocation27_spill] sm:$0xff]  ;;  %v2401_v5 = vld [vmem:[#allocation28_spill] sm:$0xff] }
 0x18b   :  { %v1987_v17 = vadd.f32 %v773_v57, %v746_v40  ;;  %v883_v47 = vmul.f32 %v1543_v25, %v586_v54  ;;  %v884_v42 = vmul.f32 %v1545_v26, %v587_v15  ;;  %v827_v3 = vadd.f32 %v811_v51, %v2398_v56 }
 0x18c   :  { %2396 = vst [vmem:[#allocation20_spill] sm:$0xff] %v1985_v27  ;;  %v828_v62 = vadd.f32 %v812_v1, %v2399_v53  ;;  %v858_v32 = vmul.f32 %v1532_v19, %v586_v54  ;;  %v859_v48 = vmul.f32 %v1534_v21, %v587_v15  ;;  %v829_v0 = vadd.f32 %v813_v59, %v786_v4  ;;  %v2402_v59 = vld [vmem:[#allocation29_spill] sm:$0xff] }
 0x18d   :  { %2397 = vst [vmem:[#allocation21_spill] sm:$0xff] %v1987_v17  ;;  %v830_v52 = vadd.f32 %v814_v16, %v787_v6  ;;  %v899_v11 = vadd.f32 %v883_v47, %v2400_v9  ;;  %v900_v44 = vadd.f32 %v884_v42, %v2401_v5  ;;  %v924_v40 = vmul.f32 %v1559_v34, %v586_v54  ;;  %v2403_v16 = vld [vmem:[#allocation30_spill] sm:$0xff] }
 0x18e   :  { %v925_v57 = vmul.f32 %v1561_v35, %v587_v15  ;;  %v956_v17 = vrot.slane %v714_v10, 7  ;;  %v957_v27 = vrot.slane %v715_v31, 7  ;;  %v2331_v1 = vrot.slane %v1977_v43, 7 }
 0x18f   :  { %v1999_v22 = vadd.f32 %v926_v63, %v899_v11  ;;  %v2001_v51 = vadd.f32 %v927_v61, %v900_v44  ;;  %v2330_v56 = vrot.slane %v1979_v2, 7  ;;  %v940_v6 = vadd.f32 %v924_v40, %v2402_v59 }
 0x190   :  { %v941_v4 = vadd.f32 %v925_v57, %v2403_v16  ;;  %v2404_v47 = vrot.slane %v1790_v49, 7  ;;  %v2405_v15 = vrot.slane %v1792_v18, 7  ;;  %v975_v61 = vsel %vm968_vm0, %v956_v17, %v2331_v1 }
 0x191   :  { %v976_v10 = vsel %vm968_vm0, %v957_v27, %v2330_v56  ;;  %v2023_v42 = vadd.f32 %v975_v61, %v829_v0  ;;  %v1007_v18 = vrot.slane %v940_v6, 1  ;;  %v2329_v11 = vrot.slane %v1999_v22, 1  ;;  %v2410_v6 = vld [vmem:[#allocation8_spill] sm:$0xff]  ;;  %v2411_v61 = vld [vmem:[#allocation31_spill] sm:$0xff] }
 0x192   :  { %v977_v54 = vsel %vm968_vm0, %v2404_v47, %v956_v17  ;;  %v978_v63 = vsel %vm968_vm0, %v2405_v15, %v957_v27  ;;  %v2025_v53 = vadd.f32 %v976_v10, %v830_v52  ;;  %v1008_v9 = vrot.slane %v941_v4, 1 }
 0x193   :  { %v991_v31 = vadd.f32 %v977_v54, %v827_v3  ;;  %v992_v49 = vadd.f32 %v978_v63, %v828_v62  ;;  %v2328_v5 = vrot.slane %v2001_v51, 1  ;;  %v622_v17 = vmul.f32 %v1511_v7, %v1953_v50 }
 0x194   :  { %2406 = vst [vmem:[#allocation22_spill] sm:$0xff] %v2025_v53  ;;  %v623_v44 = vmul.f32 %v2378_v55, %v1955_v58  ;;  %v2034_v27 = vadd.f32 %v1946_v46, %v858_v32  ;;  %v2037_v3 = vadd.f32 %v1949_v45, %v859_v48  ;;  %v2407_v62 = vrot.slane %v1843_v38, 1  ;;  %v2431_v53 = vld [vmem:[#allocation41_spill] sm:$0xff] }
 0x195   :  { %v2408_v52 = vrot.slane %v1845_v39, 1  ;;  %v1024_v57 = vsel %vm1017_vm1, %v1007_v18, %v2329_v11  ;;  %v1025_v45 = vsel %vm1017_vm1, %v1008_v9, %v2328_v5  ;;  %v2409_v39 = vld [vmem:[#allocation7_spill] sm:$0xff]  ;;  %v663_v4 = vmul.f32 %v1521_v12, %v1953_v50  ;;  %v2424_v11 = vld [vmem:[#allocation32_spill] sm:$0xff] }
 0x196   :  { %v1026_v0 = vsel %vm1017_vm1, %v2407_v62, %v1007_v18  ;;  %v1040_v32 = vadd.f32 %v1024_v57, %v991_v31  ;;  %v1041_v48 = vadd.f32 %v1025_v45, %v992_v49  ;;  %v665_v59 = vadd.f32 %v2409_v39, %v622_v17  ;;  %v2412_v18 = vld [vmem:[#allocation11_spill] sm:$0xff]  ;;  %v2413_v17 = vld [vmem:[#allocation12_spill] sm:$0xff] }
 0x197   :  { %v1027_v40 = vsel %vm1017_vm1, %v2408_v52, %v1008_v9  ;;  %v1038_v38 = vadd.f32 %v1026_v0, %v1873_v41  ;;  %v666_v16 = vadd.f32 %v2410_v6, %v623_v44  ;;  %v664_v41 = vmul.f32 %v2384_v36, %v1955_v58  ;;  %v2415_v45 = vld [vmem:[#allocation35_spill] sm:$0xff] }
 0x198   :  { %v1039_v46 = vadd.f32 %v1027_v40, %v1875_v8  ;;  %v735_v8 = vmul.f32 %v1523_v13, %v1953_v50  ;;  %v736_v47 = vmul.f32 %v1525_v14, %v1955_v58  ;;  %1056 = vst [vmem:[%s2309_s6 + $0x30] sm:$0xff] %v1040_v32  ;;  %1057 = vst [vmem:[%s2309_s6 + $0x38] sm:$0xff] %v1041_v48  ;;  %v2414_v40 = vld [vmem:[#allocation34_spill] sm:$0xff]  ;;  %v2416_v48 = vld [vmem:[#allocation15_spill] sm:$0xff]  ;;  %v2425_v56 = vrot.slane %v2424_v11, 7 }
 0x199   :  { %1054 = vst [vmem:[%s2309_s6 + $0x20] sm:$0xff] %v1038_v38  ;;  %v704_v54 = vmul.f32 %v1547_v28, %v1953_v50  ;;  %v705_v15 = vmul.f32 %v1549_v29, %v1955_v58  ;;  %v2084_v63 = vadd.f32 %v1801_v60, %v665_v59  ;;  %v2087_v10 = vadd.f32 %v2411_v61, %v666_v16  ;;  %v2417_v59 = vld [vmem:[#allocation16_spill] sm:$0xff] }
 0x19a   :  { %1055 = vst [vmem:[%s2309_s6 + $0x28] sm:$0xff] %v1039_v46  ;;  %v776_v31 = vmul.f32 %v1539_v23, %v1953_v50  ;;  %v777_v49 = vmul.f32 %v1541_v24, %v1955_v58  ;;  %v778_v9 = vadd.f32 %v2412_v18, %v735_v8  ;;  %v779_v44 = vadd.f32 %v2413_v17, %v736_v47  ;;  %v571_v47 = vpop.permute.xlu0 %570 }
 0x19b   :  { %v2097_v62 = vmul.f32 %v1551_v30, %v1953_v50  ;;  %v2101_v60 = vmul.f32 %v1557_v33, %v1955_v58  ;;  %v848_v0 = vmul.f32 %v1532_v19, %v1953_v50  ;;  %v849_v52 = vmul.f32 %v1534_v21, %v1955_v58 }
 0x19c   :  { %v2108_v57 = vadd.f32 %v2414_v40, %v778_v9  ;;  %v2111_v38 = vadd.f32 %v2415_v45, %v779_v44  ;;  %v889_v46 = vmul.f32 %v1543_v25, %v1953_v50  ;;  %v890_v32 = vmul.f32 %v1545_v26, %v1955_v58  ;;  %v2418_v9 = vld [vmem:[#allocation5_spill] sm:$0xff]  ;;  %v2420_v40 = vld [vmem:[#allocation6_spill] sm:$0xff] }
 0x19d   :  { %v891_v39 = vadd.f32 %v2416_v48, %v848_v0  ;;  %v892_v6 = vadd.f32 %v2417_v59, %v849_v52  ;;  %v2332_v16 = vrot.slane %v2084_v63, 7  ;;  %v2333_v8 = vrot.slane %v2087_v10, 7  ;;  %v2422_v52 = vld [vmem:[#allocation4_spill] sm:$0xff]  ;;  %v2423_v59 = vld [vmem:[#allocation42_spill] sm:$0xff] }
 0x19e   :  { %v2123_v61 = vmul.f32 %v1559_v34, %v1953_v50  ;;  %v2127_v18 = vmul.f32 %v1561_v35, %v1955_v58  ;;  %v2419_v17 = vmax.f32 %v2418_v9, 0.0  ;;  %v2421_v0 = vmax.f32 %v2420_v40, 0.0  ;;  %v2426_v50 = vld [vmem:[#allocation33_spill] sm:$0xff]  ;;  %v2428_v9 = vld [vmem:[#allocation36_spill] sm:$0xff] }
 0x19f   :  { %v2134_v48 = vadd.f32 %v2422_v52, %v891_v39  ;;  %v2137_v5 = vadd.f32 %v2423_v59, %v892_v6  ;;  %v981_v58 = vsel %vm968_vm0, %v2332_v16, %v2425_v56  ;;  %v2427_v1 = vrot.slane %v2426_v50, 7  ;;  %v2430_v50 = vld [vmem:[#allocation40_spill] sm:$0xff] }
 0x1a0   :  { %v590_v44 = vmul.f32 %v571_v47, %v2419_v17  ;;  %v591_v45 = vmul.f32 %v571_v47, %v2421_v0  ;;  %v987_v39 = vadd.f32 %v981_v58, %v2428_v9  ;;  %v2429_v17 = vld [vmem:[#allocation37_spill] sm:$0xff]  ;;  %v2432_v9 = vld [vmem:[#allocation38_spill] sm:$0xff] }
 0x1a1   :  { %v982_v47 = vsel %vm968_vm0, %v2333_v8, %v2427_v1  ;;  %v1001_v0 = vrot.slane %v2134_v48, 1  ;;  %v1002_v52 = vrot.slane %v2137_v5, 1 }
 0x1a2   :  { %v988_v40 = vadd.f32 %v982_v47, %v2429_v17  ;;  %v636_v6 = vmul.f32 %v1511_v7, %v590_v44  ;;  %v637_v11 = vmul.f32 %v2378_v55, %v591_v45  ;;  %v661_v56 = vmul.f32 %v1521_v12, %v590_v44  ;;  %v2434_v55 = vld [vmem:[#allocation39_spill] sm:$0xff] }
 0x1a3   :  { %v662_v59 = vmul.f32 %v2384_v36, %v591_v45  ;;  %v1036_v16 = vadd.f32 %v2430_v50, %v987_v39  ;;  %v2433_v47 = vrot.slane %v2432_v9, 1  ;;  %v2435_v17 = vrot.slane %v2434_v55, 1  ;;  %v2436_v36 = vld [vmem:[#allocation43_spill] sm:$0xff]  ;;  %v2439_v50 = vld [vmem:[#allocation10_spill] sm:$0xff] }
 0x1a4   :  { %v1037_v1 = vadd.f32 %v2431_v53, %v988_v40  ;;  %v679_v8 = vadd.f32 %v663_v4, %v636_v6  ;;  %v680_v58 = vadd.f32 %v664_v41, %v637_v11  ;;  %v677_v53 = vadd.f32 %v661_v56, %v2436_v36  ;;  %v2437_v4 = vld [vmem:[#allocation2_spill] sm:$0xff]  ;;  %v2438_v6 = vld [vmem:[#allocation9_spill] sm:$0xff] }
 0x1a5   :  { %v2167_v7 = vsel %vm1017_vm1, %v1001_v0, %v2433_v47  ;;  %v2175_v12 = vsel %vm1017_vm1, %v1002_v52, %v2435_v17  ;;  %v678_v41 = vadd.f32 %v662_v59, %v2437_v4  ;;  %1052 = vst [vmem:[%s2309_s6 + $0x10] sm:$0xff] %v1036_v16  ;;  %v702_v39 = vmul.f32 %v1547_v28, %v590_v44  ;;  %v2440_v17 = vld [vmem:[#allocation19_spill] sm:$0xff] }
 0x1a6   :  { %1053 = vst [vmem:[%s2309_s6 + $0x18] sm:$0xff] %v1037_v1  ;;  %v703_v40 = vmul.f32 %v1549_v29, %v591_v45  ;;  %v722_v11 = vadd.f32 %v2438_v6, %v679_v8  ;;  %v723_v9 = vadd.f32 %v2439_v50, %v680_v58  ;;  %v720_v47 = vadd.f32 %v704_v54, %v677_v53  ;;  %v2441_v54 = vld [vmem:[#allocation3_spill] sm:$0xff]  ;;  %v2442_v53 = vld [vmem:[#allocation44_spill] sm:$0xff]  ;;  %v2445_v6 = vld [vmem:[#allocation13_spill] sm:$0xff] }
 0x1a7   :  { %v721_v56 = vadd.f32 %v705_v15, %v678_v41  ;;  %v749_v59 = vmul.f32 %v1523_v13, %v590_v44  ;;  %v750_v55 = vmul.f32 %v1525_v14, %v591_v45  ;;  %v718_v16 = vadd.f32 %v702_v39, %v1969_v20  ;;  %v2443_v41 = vld [vmem:[#allocation20_spill] sm:$0xff] }
 0x1a8   :  { %v719_v36 = vadd.f32 %v703_v40, %v2440_v17  ;;  %v774_v1 = vmul.f32 %v1539_v23, %v590_v44  ;;  %v775_v28 = vmul.f32 %v1541_v24, %v591_v45  ;;  %v815_v8 = vmul.f32 %v1551_v30, %v590_v44  ;;  %v2444_v40 = vld [vmem:[#allocation21_spill] sm:$0xff] }
 0x1a9   :  { %v792_v4 = vadd.f32 %v776_v31, %v749_v59  ;;  %v793_v29 = vadd.f32 %v777_v49, %v750_v55  ;;  %v816_v58 = vmul.f32 %v1557_v33, %v591_v45  ;;  %v862_v14 = vmul.f32 %v1532_v19, %v590_v44  ;;  %v2446_v31 = vld [vmem:[#allocation14_spill] sm:$0xff] }
 0x1aa   :  { %v790_v15 = vadd.f32 %v774_v1, %v2441_v54  ;;  %v791_v13 = vadd.f32 %v775_v28, %v2442_v53  ;;  %v863_v20 = vmul.f32 %v1534_v21, %v591_v45  ;;  %v831_v39 = vadd.f32 %v815_v8, %v2443_v41  ;;  %v2447_v1 = vld [vmem:[#allocation45_spill] sm:$0xff]  ;;  %v2448_v8 = vld [vmem:[#allocation46_spill] sm:$0xff] }
 0x1ab   :  { %v832_v23 = vadd.f32 %v816_v58, %v2444_v40  ;;  %v835_v24 = vadd.f32 %v2445_v6, %v792_v4  ;;  %v836_v49 = vadd.f32 %v2446_v31, %v793_v29  ;;  %v887_v50 = vmul.f32 %v1543_v25, %v590_v44  ;;  %v2449_v54 = vld [vmem:[#allocation17_spill] sm:$0xff] }
 0x1ac   :  { %v833_v30 = vadd.f32 %v2097_v62, %v790_v15  ;;  %v834_v33 = vadd.f32 %v2101_v60, %v791_v13  ;;  %v888_v59 = vmul.f32 %v1545_v26, %v591_v45  ;;  %v905_v55 = vadd.f32 %v889_v46, %v862_v14  ;;  %v2450_v15 = vld [vmem:[#allocation18_spill] sm:$0xff] }
 0x1ad   :  { %v906_v19 = vadd.f32 %v890_v32, %v863_v20  ;;  %v928_v21 = vmul.f32 %v1559_v34, %v590_v44  ;;  %v929_v17 = vmul.f32 %v1561_v35, %v591_v45  ;;  %v903_v28 = vadd.f32 %v887_v50, %v2447_v1 }
 0x1ae   :  { %v904_v4 = vadd.f32 %v888_v59, %v2448_v8  ;;  %v960_v58 = vrot.slane %v718_v16, 7  ;;  %v961_v29 = vrot.slane %v719_v36, 7  ;;  %v948_v25 = vadd.f32 %v2449_v54, %v905_v55 }
 0x1af   :  { %v944_v62 = vadd.f32 %v928_v21, %v2034_v27  ;;  %v945_v60 = vadd.f32 %v929_v17, %v2037_v3  ;;  %v949_v26 = vadd.f32 %v2450_v15, %v906_v19  ;;  %v946_v46 = vadd.f32 %v2123_v61, %v903_v28  ;;  %v2457_v17 = vld [vmem:[#allocation22_spill] sm:$0xff] }
 0x1b0   :  { %v947_v34 = vadd.f32 %v2127_v18, %v904_v4  ;;  %v962_v32 = vrot.slane %v720_v47, 7  ;;  %v963_v35 = vrot.slane %v721_v56, 7  ;;  %v964_v44 = vrot.slane %v722_v11, 7 }
 0x1b1   :  { %v965_v45 = vrot.slane %v723_v9, 7  ;;  %v2451_v53 = vrot.slane %v1977_v43, 7  ;;  %v2452_v27 = vrot.slane %v1979_v2, 7  ;;  %v2453_v9 = vrot.slane %v2084_v63, 7 }
 0x1b2   :  { %v971_v36 = vsel %vm968_vm0, %v960_v58, %v962_v32  ;;  %v972_v61 = vsel %vm968_vm0, %v961_v29, %v963_v35  ;;  %v969_v11 = vsel %vm968_vm0, %v962_v32, %v964_v44  ;;  %v2454_v56 = vrot.slane %v2087_v10, 7 }
 0x1b3   :  { %v973_v16 = vsel %vm968_vm0, %v2451_v53, %v960_v58  ;;  %v974_v3 = vsel %vm968_vm0, %v2452_v27, %v961_v29  ;;  %v970_v43 = vsel %vm968_vm0, %v963_v35, %v965_v45  ;;  %v983_v2 = vsel %vm968_vm0, %v964_v44, %v2453_v9 }
 0x1b4   :  { %v995_v18 = vadd.f32 %v973_v16, %v831_v39  ;;  %v996_v47 = vadd.f32 %v974_v3, %v832_v23  ;;  %v984_v13 = vsel %vm968_vm0, %v965_v45, %v2454_v56  ;;  %v985_v14 = vadd.f32 %v983_v2, %v2108_v57 }
 0x1b5   :  { %v986_v20 = vadd.f32 %v984_v13, %v2111_v38  ;;  %v997_v41 = vadd.f32 %v971_v36, %v833_v30  ;;  %v998_v39 = vadd.f32 %v972_v61, %v834_v33  ;;  %v999_v40 = vadd.f32 %v969_v11, %v835_v24 }
 0x1b6   :  { %v1000_v23 = vadd.f32 %v970_v43, %v836_v49  ;;  %v1011_v6 = vrot.slane %v944_v62, 1  ;;  %v1012_v31 = vrot.slane %v945_v60, 1  ;;  %v1013_v50 = vrot.slane %v946_v46, 1 }
 0x1b7   :  { %v1014_v63 = vrot.slane %v947_v34, 1  ;;  %v1015_v59 = vrot.slane %v948_v25, 1  ;;  %v1016_v55 = vrot.slane %v949_v26, 1  ;;  %v2455_v19 = vrot.slane %v1999_v22, 1 }
 0x1b8   :  { %v2456_v21 = vrot.slane %v2001_v51, 1  ;;  %v1034_v38 = vadd.f32 %v2167_v7, %v985_v14  ;;  %v1035_v24 = vadd.f32 %v2175_v12, %v986_v20  ;;  %v1020_v22 = vsel %vm1017_vm1, %v1011_v6, %v1013_v50 }
 0x1b9   :  { %v1022_v10 = vsel %vm1017_vm1, %v2455_v19, %v1011_v6  ;;  %v1018_v49 = vsel %vm1017_vm1, %v1013_v50, %v1015_v59  ;;  %v1019_v30 = vsel %vm1017_vm1, %v1014_v63, %v1016_v55  ;;  %v1021_v33 = vsel %vm1017_vm1, %v1012_v31, %v1014_v63 }
 0x1ba   :  { %v1023_v57 = vsel %vm1017_vm1, %v2456_v21, %v1012_v31  ;;  %v1032_v51 = vsel %vm1017_vm1, %v1015_v59, %v1001_v0  ;;  %v1033_v7 = vsel %vm1017_vm1, %v1016_v55, %v1002_v52  ;;  %v1042_v12 = vadd.f32 %v1022_v10, %v2023_v42  ;;  %1050 = vst [vmem:[%s2309_s6] sm:$0xff] %v1034_v38 }
 0x1bb   :  { %v1043_v1 = vadd.f32 %v1023_v57, %v2457_v17  ;;  %1051 = vst [vmem:[%s2309_s6 + $0x8] sm:$0xff] %v1035_v24  ;;  %v1044_v48 = vadd.f32 %v1020_v22, %v995_v18  ;;  %v1045_v28 = vadd.f32 %v1021_v33, %v996_v47  ;;  %v1046_v0 = vadd.f32 %v1018_v49, %v997_v41 }
 0x1bc   :  { %v1047_v8 = vadd.f32 %v1019_v30, %v998_v39  ;;  %v1048_v5 = vadd.f32 %v1032_v51, %v999_v40  ;;  %v1049_v4 = vadd.f32 %v1033_v7, %v1000_v23  ;;  %1058 = vst [vmem:[%s2309_s6 + $0x40] sm:$0xff] %v1042_v12 }
 0x1bd   :  { %1059 = vst [vmem:[%s2309_s6 + $0x48] sm:$0xff] %v1043_v1  ;;  %1060 = vst [vmem:[%s2309_s6 + $0x50] sm:$0xff] %v1044_v48 }
 0x1be   :  { %1061 = vst [vmem:[%s2309_s6 + $0x58] sm:$0xff] %v1045_v28  ;;  %1062 = vst [vmem:[%s2309_s6 + $0x60] sm:$0xff] %v1046_v0 }
 0x1bf   :  { %1063 = vst [vmem:[%s2309_s6 + $0x68] sm:$0xff] %v1047_v8  ;;  %1064 = vst [vmem:[%s2309_s6 + $0x70] sm:$0xff] %v1048_v5 }
 0x1c0   :  { %1065 = vst [vmem:[%s2309_s6 + $0x78] sm:$0xff] %v1049_v4 }

</bundles_post_ra>
